<compile_context>
chip_gen: v6e
topology: v6e:2x2x1
jax: 0.10.0
libtpu: 0.0.40
codegen_flags: <defaults>
</compile_context>

<pallas_src>
import functools

import jax
import jax.numpy as jnp
from jax.experimental import pallas as pl
from jax.experimental.pallas import tpu as pltpu

_LANE = 128
_SUBLANE = 8
_TARGET_BLOCK_BYTES = 4 << 20  # ~4 MiB per input block per grid step


def _mse_partial_kernel(p_ref, t_ref, out_ref, *, nrows, tm, ragged):
    """Per-tile sum of squared differences, reduced to one (8, 128) vreg."""
    d = p_ref[...].astype(jnp.float32) - t_ref[...].astype(jnp.float32)
    sq = d * d
    if ragged:
        # Only the last block can be ragged; the compare/select is free VPU
        # filler on an HBM-bound kernel, so run it unconditionally per step.
        i = pl.program_id(0)
        valid = jnp.int32(nrows) - i * tm
        row_ids = jax.lax.broadcasted_iota(jnp.int32, (tm, _LANE), 0)
        sq = jnp.where(row_ids < valid, sq, jnp.float32(0.0))
    # Leading-axis reduction preserves the (8, 128) sublane/lane structure:
    # pure VPU adds, no cross-lane (XLU) work inside the streaming loop.
    partial = jnp.sum(sq.reshape(tm // _SUBLANE, _SUBLANE, _LANE), axis=0)
    out_ref[...] = partial[None]


def _pick_tm(m, itemsize):
    """Row-tile size: dtype-aware sublane multiple, ~4 MiB per input block."""
    itemsize = int(itemsize)
    sub = _SUBLANE * max(1, 4 // itemsize)  # 8 (f32) / 16 (bf16) / 32 (8-bit)
    max_tm = max(sub, (_TARGET_BLOCK_BYTES // (_LANE * itemsize)) // sub * sub)
    tm = min(max_tm, ((m + sub - 1) // sub) * sub)
    return int(tm)


@functools.partial(jax.jit, static_argnames=("n_elem", "tm"))
def _mse_2d(pred2d, targ2d, n_elem, tm):
    M, N = pred2d.shape
    assert N == _LANE
    nblocks = pl.cdiv(M, tm)
    ragged = (M % tm) != 0
    itemsize = int(pred2d.dtype.itemsize)
    block_bytes = tm * _LANE * itemsize
    # 2 inputs x 2 pipeline buffers x block + partial-sum outputs + headroom.
    vmem_limit = int(min(max(4 * block_bytes + (2 << 20), 8 << 20), 48 << 20))

    kernel = functools.partial(_mse_partial_kernel, nrows=M, tm=tm, ragged=ragged)
    partials = pl.pallas_call(
        kernel,
        out_shape=jax.ShapeDtypeStruct((nblocks, _SUBLANE, _LANE), jnp.float32),
        grid_spec=pltpu.PrefetchScalarGridSpec(
            num_scalar_prefetch=0,
            grid=(nblocks,),
            in_specs=[
                pl.BlockSpec((tm, _LANE), lambda i: (i, 0)),
                pl.BlockSpec((tm, _LANE), lambda i: (i, 0)),
            ],
            out_specs=pl.BlockSpec((1, _SUBLANE, _LANE), lambda i: (i, 0, 0)),
        ),
        compiler_params=pltpu.CompilerParams(
            # Distinct output block per step -> fully parallel axis; lets the
            # runtime split the stream across both v7x TensorCores.
            dimension_semantics=("parallel",),
            vmem_limit_bytes=vmem_limit,
        ),
        cost_estimate=pl.CostEstimate(
            flops=3 * n_elem,
            transcendentals=0,
            bytes_accessed=2 * n_elem * itemsize + nblocks * _SUBLANE * _LANE * 4,
        ),
    )(pred2d, targ2d)
    return jnp.sum(partials, dtype=jnp.float32) / jnp.float32(n_elem)


class RecommenderCriterion:
    """JAX/Pallas port of the PyTorch RecommenderCriterion (F.mse_loss, mean)."""

    def __init__(self, loss_weights=None):
        self.loss_weights = dict(loss_weights or {})

    def __call__(self, predictions, targets):
        assert predictions.shape == targets.shape
        n_elem = int(predictions.size)

        p = predictions.reshape(-1)
        t = targets.reshape(-1)
        # Lane alignment only: pad (identically, with zeros -> zero diff, so the
        # SSE is unaffected) only when the flat size isn't a multiple of 128.
        # Typical recommender tensors hit the copy-free path; ragged row tiles
        # are masked inside the kernel, so no pad-to-1024 copy is ever made.
        pad = (-n_elem) % _LANE
        if pad:
            p = jnp.pad(p, (0, pad))
            t = jnp.pad(t, (0, pad))
        p2d = p.reshape(-1, _LANE)
        t2d = t.reshape(-1, _LANE)

        tm = _pick_tm(p2d.shape[0], p2d.dtype.itemsize)
        mse = _mse_2d(p2d, t2d, n_elem, tm)

        losses = {"mse": mse}
        overall = jnp.float32(0.0)
        for name in list(losses.keys()):
            overall = overall + losses[name] * self.loss_weights.get(name, 1)
        losses["overall"] = overall
        return losses


if __name__ == "__main__":
    key = jax.random.PRNGKey(0)
    kp, kt = jax.random.split(key)
    # Small shapes consistent with a recommender prediction tensor.
    shape = (2, 4, 16, 16)  # B, C, H, W -> 2048 elements -> (16, 128) slab
    predictions = jax.random.normal(kp, shape, dtype=jnp.float32)
    targets = jax.random.normal(kt, shape, dtype=jnp.float32)

    criterion = RecommenderCriterion(loss_weights={"mse": 2.0})
    losses = criterion(predictions, targets)
    jax.block_until_ready(losses["overall"])

    # Reference check against plain-JAX MSE.
    ref_mse = jnp.mean((predictions - targets) ** 2)
    assert jnp.allclose(losses["mse"], ref_mse, rtol=1e-5, atol=1e-5)
    assert jnp.allclose(losses["overall"], ref_mse * 2.0, rtol=1e-5, atol=1e-5)

    print("KERNEL_OK")
</pallas_src>

<mosaic_0001>
module attributes {stable_mosaic.version = 11 : i64} {
  func.func @_mse_partial_kernel(%arg0: i32, %arg1: memref<16x128xf32, #tpu.memory_space<vmem>>, %arg2: memref<16x128xf32, #tpu.memory_space<vmem>>, %arg3: memref<1x8x128xf32, #tpu.memory_space<vmem>>) attributes {dimension_semantics = [#tpu.dimension_semantics<parallel>], iteration_bounds = array<i64: 1>, scalar_prefetch = 0 : i64, scratch_operands = 0 : i64, tpu.core_type = #tpu.core_type<tc>, window_params = [{transform_indices = @transform_0, window_bounds = array<i64: 16, 128>}, {transform_indices = @transform_1, window_bounds = array<i64: 16, 128>}, {transform_indices = @transform_2, window_bounds = array<i64: 1, 8, 128>}]} {
    %c0 = arith.constant 0 : index
    %c0_0 = arith.constant 0 : index
    %0 = vector.load %arg1[%c0, %c0_0] : memref<16x128xf32, #tpu.memory_space<vmem>>, vector<16x128xf32>
    %c0_1 = arith.constant 0 : index
    %c0_2 = arith.constant 0 : index
    %1 = vector.load %arg2[%c0_1, %c0_2] : memref<16x128xf32, #tpu.memory_space<vmem>>, vector<16x128xf32>
    %2 = arith.subf %0, %1 : vector<16x128xf32>
    %3 = arith.mulf %2, %2 : vector<16x128xf32>
    %4 = vector.shape_cast %3 : vector<16x128xf32> to vector<2x8x128xf32>
    %cst = arith.constant dense<0.000000e+00> : vector<8x128xf32>
    %5 = vector.multi_reduction <add>, %4, %cst [0] : vector<2x8x128xf32> to vector<8x128xf32>
    %6 = vector.shape_cast %5 : vector<8x128xf32> to vector<1x8x128xf32>
    %c0_3 = arith.constant 0 : index
    %c0_4 = arith.constant 0 : index
    %c0_5 = arith.constant 0 : index
    %7 = vector.load %arg3[%c0_3, %c0_4, %c0_5] : memref<1x8x128xf32, #tpu.memory_space<vmem>>, vector<1x8x128xf32>
    tpu.vector_store %arg3[%c0_3, %c0_4, %c0_5], %6 {strides = array<i32>} : memref<1x8x128xf32, #tpu.memory_space<vmem>>, vector<1x8x128xf32>,
    return
  }
  func.func @transform_0(%arg0: i32) -> (i32, i32) {
    %c0_i32 = arith.constant 0 : i32
    %c0_i32_0 = arith.constant 0 : i32
    return %arg0, %c0_i32 : i32, i32
  }
  func.func @transform_1(%arg0: i32) -> (i32, i32) {
    %c0_i32 = arith.constant 0 : i32
    %c0_i32_0 = arith.constant 0 : i32
    return %arg0, %c0_i32 : i32, i32
  }
  func.func @transform_2(%arg0: i32) -> (i32, i32, i32) {
    %c0_i32 = arith.constant 0 : i32
    %c0_i32_0 = arith.constant 0 : i32
    %c0_i32_1 = arith.constant 0 : i32
    return %arg0, %c0_i32, %c0_i32_0 : i32, i32, i32
  }
}

</mosaic_0001>

<bundles_post_ra>
// kernel: _mse_2d.1
= control target key start
LH: loop header
LB: loop body
LE: loop exit
PB: predicated region body
PF: predicated region fallthrough
CT: control target
= control target key end

     0   :  { %7 = vsyncpa [#allocation3], 0  ;;  %s131_s0 = inlined_call_operand.hbm [shape: f32[16,128], index: 0, kind: input, shape index: {}]   ;;  %s132_s1 = inlined_call_operand.hbm [shape: f32[16,128], index: 1, kind: input, shape index: {}]   ;;  %s133_s2 = inlined_call_operand.vmem [shape: f32[1,8,128], index: 2, kind: output, shape index: {}]  }
   0x1   :  { %8 = vsyncpa [#allocation5], 0  ;;  %s103_s9 = smov [#allocation2]  }
   0x2   :  { %s14_s10 = sshll.u32 %s103_s9, 4  ;;  %s15_s10 = int_to_ptr.vmem [resolvable:$true] %s14_s10 }
   0x3   :  { %s67_s11 = scalar_lea.vmem %s15_s10, 256  ;;  %p72_p1 = scmp.lt.s32.totalorder %s15_s10, %s15_s10 }
   0x4   :  { %p68_p0 = scmp.ne.s32.totalorder %s15_s10, %s67_s11  ;;  %p73_p2 = scmp.lt.s32.totalorder %s67_s11, %s67_s11 }
   0x6   :  { %p74_p3 = por %p73_p2, %p72_p1 }
   0x8   :  { %p75_p4 = pnand %p74_p3, %p68_p0 }
   0xa   :  { %78 = shalt.err (!%p75_p4)
}
   0xb   :  { %s104_s12 = smov 128   ;;  %s105_s13 = smov 8  }
   0xc   :  { %20 = dma.hbm_to_vmem [thread:$0]  %s131_s0, 256, %s15_s10, [#allocation3], %s104_s12, %s104_s12, %s105_s13  }
   0xd   :  { %s106_s16 = smov [#allocation4]  }
   0xe   :  { %s26_s17 = sshll.u32 %s106_s16, 4  ;;  %s27_s17 = int_to_ptr.vmem [resolvable:$true] %s26_s17 }
   0xf   :  { %s87_s18 = scalar_lea.vmem %s27_s17, 256  ;;  %p92_p6 = scmp.lt.s32.totalorder %s27_s17, %s27_s17 }
  0x10   :  { %p88_p5 = scmp.ne.s32.totalorder %s27_s17, %s87_s18  ;;  %p93_p7 = scmp.lt.s32.totalorder %s87_s18, %s87_s18 }
  0x12   :  { %p94_p8 = por %p93_p7, %p92_p6 }
  0x14   :  { %p95_p9 = pnand %p94_p8, %p88_p5 }
  0x16   :  { %98 = shalt.err (!%p95_p9)
}
  0x17   :  { %32 = dma.hbm_to_vmem [thread:$0]  %s132_s1, 256, %s27_s17, [#allocation5], %s104_s12, %s104_s12, %s105_s13  }
  0x18   :  { %99 = dma.done.wait [#allocation3], 256  }
  0x19   :  { %100 = vsyncadd [#allocation3], 4294967040 }
  0x1a   :  { %101 = dma.done.wait [#allocation5], 256  }
  0x1b   :  { %102 = vsyncadd [#allocation5], 4294967040  ;;  %v39_v0 = vld [vmem:[#allocation2] sm:$0xff]  ;;  %v40_v1 = vld [vmem:[#allocation2 + $0x8] sm:$0xff] }
  0x1c   :  { %v41_v2 = vld [vmem:[#allocation4] sm:$0xff]  ;;  %v42_v3 = vld [vmem:[#allocation4 + $0x8] sm:$0xff] }
  0x1d   :  { %v43_v4 = vsub.f32 %v39_v0, %v41_v2  ;;  %v44_v5 = vsub.f32 %v40_v1, %v42_v3 }
  0x1f   :  { %v45_v6 = vmul.f32 %v43_v4, %v43_v4  ;;  %v46_v7 = vmul.f32 %v44_v5, %v44_v5 }
  0x21   :  { %v47_v8 = vadd.f32 %v46_v7, %v45_v6 }
  0x23   :  { %48 = vst [vmem:[%s133_s2] sm:$0xff] %v47_v8 }
  0x24   :  { %53 = vsyncpa [#allocation3], 1 }
  0x25   :  { %54 = vsyncpa [#allocation5], 1 }

</bundles_post_ra>
